<compile_context>
chip_gen: v7x
topology: tpu7x:2x2x1
jax: 0.10.0
libtpu: 0.0.40
codegen_flags: <defaults>
</compile_context>

<pallas_src>
import functools

import jax
import jax.numpy as jnp
from jax import lax
from jax.experimental import pallas as pl
from jax.experimental.pallas import tpu as pltpu


def _attention_kernel(x_ref, wqkv_ref, wp_ref, bp_ref, o_ref, ostage_ref,
                      *, num_heads):
    """Grid = (B,): one batch element per step, all heads handled in-body.

    x_ref:      (1, N, C)   tokens for batch element b
    wqkv_ref:   (C, 3C)     fused QKV weight (pre-transposed; Q columns pre-scaled)
    wp_ref:     (C, C)      output-projection weight (pre-transposed)
    bp_ref:     (1, C) f32  output-projection bias
    o_ref:      (1, N, C)   output block
    ostage_ref: (N, C) dt   VMEM staging buffer for head-major PV outputs
    """
    x = x_ref[0]                      # (N, C) in the input dtype — no f32 upcast
    dt = x.dtype
    N, C = x.shape
    Dh = C // num_heads

    # One fused QKV projection (lane-dense 3C-wide output), f32 MXU
    # accumulation, single cast back to the compute dtype.
    qkv = jnp.dot(x, wqkv_ref[...], preferred_element_type=jnp.float32)
    qkv = qkv.astype(dt)              # (N, 3C), columns ordered (q|k|v) x (h, d)

    # Heads as a static Python loop (H is a trace-time constant): all slices
    # are static, all matmuls plain 2D, no per-head grid steps / weight DMA.
    # TODO(synk): for very large H, switch to lax.fori_loop + dynamic lane
    # slices to bound live ranges; at ViT head counts (<=16) unrolling is fine.
    for h in range(num_heads):
        q = qkv[:, h * Dh:(h + 1) * Dh]                     # (N, Dh), pre-scaled
        k = qkv[:, C + h * Dh:C + (h + 1) * Dh]             # (N, Dh)
        v = qkv[:, 2 * C + h * Dh:2 * C + (h + 1) * Dh]     # (N, Dh)

        # scores = q @ k^T as a Dh-contraction (no materialized transpose).
        s = lax.dot_general(q, k, (((1,), (1,)), ((), ())),
                            preferred_element_type=jnp.float32)  # (N, N) f32

        # Numerically stable softmax, kept UNNORMALIZED for the PV matmul;
        # normalization is applied to the small (N, Dh) PV result instead.
        m = jnp.max(s, axis=-1, keepdims=True)
        p = jnp.exp(s - m)                                   # (N, N) f32
        l = jnp.sum(p, axis=-1, keepdims=True)               # (N, 1) f32

        o_h = jnp.dot(p.astype(dt), v,
                      preferred_element_type=jnp.float32)     # (N, Dh) f32
        o_h = o_h * pl.reciprocal(l, approx=False)            # post-PV normalize

        # Stage this head's output head-major; static column slice.
        ostage_ref[:, h * Dh:(h + 1) * Dh] = o_h.astype(dt)

    # Single full-depth (K = C) output projection for all heads at once.
    y = jnp.dot(ostage_ref[...], wp_ref[...],
                preferred_element_type=jnp.float32)           # (N, C) f32
    y = y + bp_ref[...]                                       # bias bcast over N
    o_ref[0] = y.astype(o_ref.dtype)


def attention_forward(x, w_qkv, w_proj, b_proj, *, num_heads):
    """Pallas-fused ViT attention.

    x:      (B, N, C)
    w_qkv:  (3C, C)   PyTorch nn.Linear weight layout (out, in), qkv_bias=False
    w_proj: (C, C)    PyTorch nn.Linear weight layout (out, in)
    b_proj: (C,)
    """
    B, N, C = x.shape
    H = num_heads
    Dh = C // H
    scale = Dh ** (-0.5)
    dt = x.dtype

    # Wrapper-side weight packing (layout plumbing, not on the hot path):
    #  - fused QKV weight transposed to (C, 3C) so the kernel does x @ W;
    #    the attention scale is folded into the Q columns (scaled in the
    #    original precision, then cast once to the compute dtype).
    w_qkv_t = jnp.transpose(w_qkv)                                   # (C, 3C)
    w_qkv_t = jnp.concatenate(
        [w_qkv_t[:, :C] * scale, w_qkv_t[:, C:]], axis=-1).astype(dt)
    wp = jnp.transpose(w_proj).astype(dt)                            # (C, C)
    bp = b_proj.reshape(1, C).astype(jnp.float32)                    # bias in f32

    kernel = functools.partial(_attention_kernel, num_heads=num_heads)

    # TODO(synk): for ViT-scale N (577+) add a kv-tile axis with flash-style
    # online softmax; and on v7x with B == 1, add a query-tile "parallel"
    # axis so both TensorCores get work.  At the shapes this module is used
    # with, per-step residency (x, qkv, one head's scores, staging buffer,
    # resident weights) fits comfortably in scoped VMEM.
    return pl.pallas_call(
        kernel,
        out_shape=jax.ShapeDtypeStruct((B, N, C), x.dtype),
        grid_spec=pltpu.PrefetchScalarGridSpec(
            num_scalar_prefetch=0,
            grid=(B,),
            in_specs=[
                pl.BlockSpec((1, N, C), lambda b: (b, 0, 0)),     # x, per batch
                pl.BlockSpec((C, 3 * C), lambda b: (0, 0)),       # Wqkv, resident
                pl.BlockSpec((C, C), lambda b: (0, 0)),           # Wproj, resident
                pl.BlockSpec((1, C), lambda b: (0, 0)),           # bias, resident
            ],
            out_specs=pl.BlockSpec((1, N, C), lambda b: (b, 0, 0)),
            scratch_shapes=[pltpu.VMEM((N, C), x.dtype)],         # head-major staging
        ),
        compiler_params=pltpu.CompilerParams(
            dimension_semantics=("parallel",),          # batch steps independent
            vmem_limit_bytes=48 * 1024 * 1024,          # headroom; v7x-safe (<64 MiB)
        ),
    )(x, w_qkv_t, wp, bp)


def attention_reference(x, w_qkv, w_proj, b_proj, *, num_heads):
    """Pure-JAX reference replicating the PyTorch forward exactly."""
    B, N, C = x.shape
    head_dim = C // num_heads
    scale = head_dim ** (-0.5)

    qkv = x @ w_qkv.T                                           # (B, N, 3C)
    qkv = qkv.reshape(B, N, 3, num_heads, head_dim)
    qkv = jnp.transpose(qkv, (2, 0, 3, 1, 4))                   # (3, B, H, N, Dh)
    q, k, v = qkv[0], qkv[1], qkv[2]
    attn = (q @ jnp.swapaxes(k, -2, -1)) * scale                # (B, H, N, N)
    attn = jax.nn.softmax(attn, axis=-1)
    out = attn @ v                                              # (B, H, N, Dh)
    out = jnp.transpose(out, (0, 2, 1, 3)).reshape(B, N, C)
    return out @ w_proj.T + b_proj


if __name__ == "__main__":
    # Small shapes consistent with the module: B=2, N=8 tokens, C=32 dim, 4 heads.
    B, N, C = 2, 8, 32
    num_heads = 4

    key = jax.random.PRNGKey(0)
    kx, kqkv, kproj, kb = jax.random.split(key, 4)

    x = jax.random.normal(kx, (B, N, C), dtype=jnp.float32)
    # Deterministic synthetic parameters (no checkpoint).
    w_qkv = jax.random.normal(kqkv, (3 * C, C), dtype=jnp.float32) * (C ** -0.5)
    w_proj = jax.random.normal(kproj, (C, C), dtype=jnp.float32) * (C ** -0.5)
    b_proj = jax.random.normal(kb, (C,), dtype=jnp.float32) * 0.02
    # TODO(synk): qkv_bias=False (module default) so no qkv bias parameter;
    # attn_drop/proj_drop are 0.0 -> identity, not implemented as RNG dropout.

    out = attention_forward(x, w_qkv, w_proj, b_proj, num_heads=num_heads)
    out = jax.block_until_ready(out)

    ref = attention_reference(x, w_qkv, w_proj, b_proj, num_heads=num_heads)
    assert out.shape == (B, N, C)
    # Scale folding into Wq and post-PV normalization introduce only rounding
    # level deviations vs. the exact reference (all-f32 in this test).
    assert jnp.allclose(out, ref, atol=2e-3, rtol=2e-3), "mismatch vs reference"

    print("KERNEL_OK")
</pallas_src>

<mosaic_0001>
module attributes {stable_mosaic.version = 11 : i64} {
  func.func @_attention_kernel(%arg0: i32, %arg1: memref<1x8x32xf32, #tpu.memory_space<vmem>>, %arg2: memref<32x96xf32, #tpu.memory_space<vmem>>, %arg3: memref<32x32xf32, #tpu.memory_space<vmem>>, %arg4: memref<1x32xf32, #tpu.memory_space<vmem>>, %arg5: memref<1x8x32xf32, #tpu.memory_space<vmem>>, %arg6: memref<8x32xf32, #tpu.memory_space<vmem>>) attributes {dimension_semantics = [#tpu.dimension_semantics<parallel>], iteration_bounds = array<i64: 2>, scalar_prefetch = 0 : i64, scratch_operands = 1 : i64, tpu.core_type = #tpu.core_type<tc>, window_params = [{transform_indices = @transform_0, window_bounds = array<i64: 1, 8, 32>}, {pipeline_mode = #tpu.pipeline_mode<synchronous>, transform_indices = @transform_1, window_bounds = array<i64: 32, 96>}, {pipeline_mode = #tpu.pipeline_mode<synchronous>, transform_indices = @transform_2, window_bounds = array<i64: 32, 32>}, {pipeline_mode = #tpu.pipeline_mode<synchronous>, transform_indices = @transform_3, window_bounds = array<i64: 1, 32>}, {transform_indices = @transform_4, window_bounds = array<i64: 1, 8, 32>}]} {
    %c0 = arith.constant 0 : index
    %c0_0 = arith.constant 0 : index
    %c0_1 = arith.constant 0 : index
    %0 = vector.load %arg1[%c0, %c0_0, %c0_1] : memref<1x8x32xf32, #tpu.memory_space<vmem>>, vector<1x8x32xf32>
    %1 = vector.shape_cast %0 : vector<1x8x32xf32> to vector<8x32xf32>
    %c0_2 = arith.constant 0 : index
    %c0_3 = arith.constant 0 : index
    %2 = vector.load %arg2[%c0_2, %c0_3] : memref<32x96xf32, #tpu.memory_space<vmem>>, vector<32x96xf32>
    %cst = arith.constant dense<0.000000e+00> : vector<8x96xf32>
    %3 = tpu.matmul %1, %2, %cst {dimension_numbers = #tpu.dot_dimension_numbers<[1], [0], [0], [1], [0, 0, 1, 1], [], []>} : vector<8x32xf32>, vector<32x96xf32>, vector<8x96xf32> -> vector<8x96xf32>
    %4 = vector.extract_strided_slice %3 {offsets = [0, 0], sizes = [8, 8], strides = [1, 1]} : vector<8x96xf32> to vector<8x8xf32>
    %5 = vector.extract_strided_slice %3 {offsets = [0, 32], sizes = [8, 8], strides = [1, 1]} : vector<8x96xf32> to vector<8x8xf32>
    %6 = vector.extract_strided_slice %3 {offsets = [0, 64], sizes = [8, 8], strides = [1, 1]} : vector<8x96xf32> to vector<8x8xf32>
    %cst_4 = arith.constant dense<0.000000e+00> : vector<8x8xf32>
    %7 = tpu.matmul %4, %5, %cst_4 {dimension_numbers = #tpu.dot_dimension_numbers<[1], [1], [0], [0], [0, 0, 1, 0], [], []>} : vector<8x8xf32>, vector<8x8xf32>, vector<8x8xf32> -> vector<8x8xf32>
    %cst_5 = arith.constant dense<0xFF800000> : vector<8xf32>
    %8 = vector.multi_reduction <maximumf>, %7, %cst_5 [1] : vector<8x8xf32> to vector<8xf32>
    %9 = vector.shape_cast %8 : vector<8xf32> to vector<8x1xf32>
    %10 = vector.broadcast %9 : vector<8x1xf32> to vector<8x8xf32>
    %11 = arith.subf %7, %10 : vector<8x8xf32>
    %12 = math.exp %11 : vector<8x8xf32>
    %cst_6 = arith.constant dense<0.000000e+00> : vector<8xf32>
    %13 = vector.multi_reduction <add>, %12, %cst_6 [1] : vector<8x8xf32> to vector<8xf32>
    %14 = vector.shape_cast %13 : vector<8xf32> to vector<8x1xf32>
    %cst_7 = arith.constant dense<0.000000e+00> : vector<8x8xf32>
    %15 = tpu.matmul %12, %6, %cst_7 {dimension_numbers = #tpu.dot_dimension_numbers<[1], [0], [0], [1], [0, 0, 1, 1], [], []>} : vector<8x8xf32>, vector<8x8xf32>, vector<8x8xf32> -> vector<8x8xf32>
    %16 = tpu.reciprocal %14 : vector<8x1xf32> -> vector<8x1xf32>
    %17 = vector.broadcast %16 : vector<8x1xf32> to vector<8x8xf32>
    %18 = arith.mulf %15, %17 : vector<8x8xf32>
    %c0_8 = arith.constant 0 : index
    %c0_9 = arith.constant 0 : index
    %19 = vector.load %arg6[%c0_8, %c0_9] : memref<8x32xf32, #tpu.memory_space<vmem>>, vector<8x8xf32>
    tpu.vector_store %arg6[%c0_8, %c0_9], %18 {strides = array<i32>} : memref<8x32xf32, #tpu.memory_space<vmem>>, vector<8x8xf32>,
    %20 = vector.extract_strided_slice %3 {offsets = [0, 8], sizes = [8, 8], strides = [1, 1]} : vector<8x96xf32> to vector<8x8xf32>
    %21 = vector.extract_strided_slice %3 {offsets = [0, 40], sizes = [8, 8], strides = [1, 1]} : vector<8x96xf32> to vector<8x8xf32>
    %22 = vector.extract_strided_slice %3 {offsets = [0, 72], sizes = [8, 8], strides = [1, 1]} : vector<8x96xf32> to vector<8x8xf32>
    %cst_10 = arith.constant dense<0.000000e+00> : vector<8x8xf32>
    %23 = tpu.matmul %20, %21, %cst_10 {dimension_numbers = #tpu.dot_dimension_numbers<[1], [1], [0], [0], [0, 0, 1, 0], [], []>} : vector<8x8xf32>, vector<8x8xf32>, vector<8x8xf32> -> vector<8x8xf32>
    %cst_11 = arith.constant dense<0xFF800000> : vector<8xf32>
    %24 = vector.multi_reduction <maximumf>, %23, %cst_11 [1] : vector<8x8xf32> to vector<8xf32>
    %25 = vector.shape_cast %24 : vector<8xf32> to vector<8x1xf32>
    %26 = vector.broadcast %25 : vector<8x1xf32> to vector<8x8xf32>
    %27 = arith.subf %23, %26 : vector<8x8xf32>
    %28 = math.exp %27 : vector<8x8xf32>
    %cst_12 = arith.constant dense<0.000000e+00> : vector<8xf32>
    %29 = vector.multi_reduction <add>, %28, %cst_12 [1] : vector<8x8xf32> to vector<8xf32>
    %30 = vector.shape_cast %29 : vector<8xf32> to vector<8x1xf32>
    %cst_13 = arith.constant dense<0.000000e+00> : vector<8x8xf32>
    %31 = tpu.matmul %28, %22, %cst_13 {dimension_numbers = #tpu.dot_dimension_numbers<[1], [0], [0], [1], [0, 0, 1, 1], [], []>} : vector<8x8xf32>, vector<8x8xf32>, vector<8x8xf32> -> vector<8x8xf32>
    %32 = tpu.reciprocal %30 : vector<8x1xf32> -> vector<8x1xf32>
    %33 = vector.broadcast %32 : vector<8x1xf32> to vector<8x8xf32>
    %34 = arith.mulf %31, %33 : vector<8x8xf32>
    %c0_14 = arith.constant 0 : index
    %c8 = arith.constant 8 : index
    %35 = vector.load %arg6[%c0_14, %c8] : memref<8x32xf32, #tpu.memory_space<vmem>>, vector<8x8xf32>
    tpu.vector_store %arg6[%c0_14, %c8], %34 {strides = array<i32>} : memref<8x32xf32, #tpu.memory_space<vmem>>, vector<8x8xf32>,
    %36 = vector.extract_strided_slice %3 {offsets = [0, 16], sizes = [8, 8], strides = [1, 1]} : vector<8x96xf32> to vector<8x8xf32>
    %37 = vector.extract_strided_slice %3 {offsets = [0, 48], sizes = [8, 8], strides = [1, 1]} : vector<8x96xf32> to vector<8x8xf32>
    %38 = vector.extract_strided_slice %3 {offsets = [0, 80], sizes = [8, 8], strides = [1, 1]} : vector<8x96xf32> to vector<8x8xf32>
    %cst_15 = arith.constant dense<0.000000e+00> : vector<8x8xf32>
    %39 = tpu.matmul %36, %37, %cst_15 {dimension_numbers = #tpu.dot_dimension_numbers<[1], [1], [0], [0], [0, 0, 1, 0], [], []>} : vector<8x8xf32>, vector<8x8xf32>, vector<8x8xf32> -> vector<8x8xf32>
    %cst_16 = arith.constant dense<0xFF800000> : vector<8xf32>
    %40 = vector.multi_reduction <maximumf>, %39, %cst_16 [1] : vector<8x8xf32> to vector<8xf32>
    %41 = vector.shape_cast %40 : vector<8xf32> to vector<8x1xf32>
    %42 = vector.broadcast %41 : vector<8x1xf32> to vector<8x8xf32>
    %43 = arith.subf %39, %42 : vector<8x8xf32>
    %44 = math.exp %43 : vector<8x8xf32>
    %cst_17 = arith.constant dense<0.000000e+00> : vector<8xf32>
    %45 = vector.multi_reduction <add>, %44, %cst_17 [1] : vector<8x8xf32> to vector<8xf32>
    %46 = vector.shape_cast %45 : vector<8xf32> to vector<8x1xf32>
    %cst_18 = arith.constant dense<0.000000e+00> : vector<8x8xf32>
    %47 = tpu.matmul %44, %38, %cst_18 {dimension_numbers = #tpu.dot_dimension_numbers<[1], [0], [0], [1], [0, 0, 1, 1], [], []>} : vector<8x8xf32>, vector<8x8xf32>, vector<8x8xf32> -> vector<8x8xf32>
    %48 = tpu.reciprocal %46 : vector<8x1xf32> -> vector<8x1xf32>
    %49 = vector.broadcast %48 : vector<8x1xf32> to vector<8x8xf32>
    %50 = arith.mulf %47, %49 : vector<8x8xf32>
    %c0_19 = arith.constant 0 : index
    %c16 = arith.constant 16 : index
    %51 = vector.load %arg6[%c0_19, %c16] : memref<8x32xf32, #tpu.memory_space<vmem>>, vector<8x8xf32>
    tpu.vector_store %arg6[%c0_19, %c16], %50 {strides = array<i32>} : memref<8x32xf32, #tpu.memory_space<vmem>>, vector<8x8xf32>,
    %52 = vector.extract_strided_slice %3 {offsets = [0, 24], sizes = [8, 8], strides = [1, 1]} : vector<8x96xf32> to vector<8x8xf32>
    %53 = vector.extract_strided_slice %3 {offsets = [0, 56], sizes = [8, 8], strides = [1, 1]} : vector<8x96xf32> to vector<8x8xf32>
    %54 = vector.extract_strided_slice %3 {offsets = [0, 88], sizes = [8, 8], strides = [1, 1]} : vector<8x96xf32> to vector<8x8xf32>
    %cst_20 = arith.constant dense<0.000000e+00> : vector<8x8xf32>
    %55 = tpu.matmul %52, %53, %cst_20 {dimension_numbers = #tpu.dot_dimension_numbers<[1], [1], [0], [0], [0, 0, 1, 0], [], []>} : vector<8x8xf32>, vector<8x8xf32>, vector<8x8xf32> -> vector<8x8xf32>
    %cst_21 = arith.constant dense<0xFF800000> : vector<8xf32>
    %56 = vector.multi_reduction <maximumf>, %55, %cst_21 [1] : vector<8x8xf32> to vector<8xf32>
    %57 = vector.shape_cast %56 : vector<8xf32> to vector<8x1xf32>
    %58 = vector.broadcast %57 : vector<8x1xf32> to vector<8x8xf32>
    %59 = arith.subf %55, %58 : vector<8x8xf32>
    %60 = math.exp %59 : vector<8x8xf32>
    %cst_22 = arith.constant dense<0.000000e+00> : vector<8xf32>
    %61 = vector.multi_reduction <add>, %60, %cst_22 [1] : vector<8x8xf32> to vector<8xf32>
    %62 = vector.shape_cast %61 : vector<8xf32> to vector<8x1xf32>
    %cst_23 = arith.constant dense<0.000000e+00> : vector<8x8xf32>
    %63 = tpu.matmul %60, %54, %cst_23 {dimension_numbers = #tpu.dot_dimension_numbers<[1], [0], [0], [1], [0, 0, 1, 1], [], []>} : vector<8x8xf32>, vector<8x8xf32>, vector<8x8xf32> -> vector<8x8xf32>
    %64 = tpu.reciprocal %62 : vector<8x1xf32> -> vector<8x1xf32>
    %65 = vector.broadcast %64 : vector<8x1xf32> to vector<8x8xf32>
    %66 = arith.mulf %63, %65 : vector<8x8xf32>
    %c0_24 = arith.constant 0 : index
    %c24 = arith.constant 24 : index
    %67 = vector.load %arg6[%c0_24, %c24] : memref<8x32xf32, #tpu.memory_space<vmem>>, vector<8x8xf32>
    tpu.vector_store %arg6[%c0_24, %c24], %66 {strides = array<i32>} : memref<8x32xf32, #tpu.memory_space<vmem>>, vector<8x8xf32>,
    %c0_25 = arith.constant 0 : index
    %c0_26 = arith.constant 0 : index
    %68 = vector.load %arg6[%c0_25, %c0_26] : memref<8x32xf32, #tpu.memory_space<vmem>>, vector<8x32xf32>
    %c0_27 = arith.constant 0 : index
    %c0_28 = arith.constant 0 : index
    %69 = vector.load %arg3[%c0_27, %c0_28] : memref<32x32xf32, #tpu.memory_space<vmem>>, vector<32x32xf32>
    %cst_29 = arith.constant dense<0.000000e+00> : vector<8x32xf32>
    %70 = tpu.matmul %68, %69, %cst_29 {dimension_numbers = #tpu.dot_dimension_numbers<[1], [0], [0], [1], [0, 0, 1, 1], [], []>} : vector<8x32xf32>, vector<32x32xf32>, vector<8x32xf32> -> vector<8x32xf32>
    %c0_30 = arith.constant 0 : index
    %c0_31 = arith.constant 0 : index
    %71 = vector.load %arg4[%c0_30, %c0_31] : memref<1x32xf32, #tpu.memory_space<vmem>>, vector<1x32xf32>
    %72 = vector.broadcast %71 : vector<1x32xf32> to vector<8x32xf32>
    %73 = arith.addf %70, %72 : vector<8x32xf32>
    %c0_32 = arith.constant 0 : index
    %c0_33 = arith.constant 0 : index
    %c0_34 = arith.constant 0 : index
    %74 = vector.load %arg5[%c0_32, %c0_33, %c0_34] : memref<1x8x32xf32, #tpu.memory_space<vmem>>, vector<1x8x32xf32>
    %75 = vector.shape_cast %74 : vector<1x8x32xf32> to vector<8x32xf32>
    %76 = vector.shape_cast %73 : vector<8x32xf32> to vector<1x8x32xf32>
    tpu.vector_store %arg5[%c0_32, %c0_33, %c0_34], %76 {strides = array<i32>} : memref<1x8x32xf32, #tpu.memory_space<vmem>>, vector<1x8x32xf32>,
    return
  }
  func.func @transform_0(%arg0: i32) -> (i32, i32, i32) {
    %c0_i32 = arith.constant 0 : i32
    %c0_i32_0 = arith.constant 0 : i32
    %c0_i32_1 = arith.constant 0 : i32
    return %arg0, %c0_i32, %c0_i32_0 : i32, i32, i32
  }
  func.func @transform_1(%arg0: i32) -> (i32, i32) {
    %c0_i32 = arith.constant 0 : i32
    %c0_i32_0 = arith.constant 0 : i32
    %c0_i32_1 = arith.constant 0 : i32
    return %c0_i32, %c0_i32_0 : i32, i32
  }
  func.func @transform_2(%arg0: i32) -> (i32, i32) {
    %c0_i32 = arith.constant 0 : i32
    %c0_i32_0 = arith.constant 0 : i32
    %c0_i32_1 = arith.constant 0 : i32
    return %c0_i32, %c0_i32_0 : i32, i32
  }
  func.func @transform_3(%arg0: i32) -> (i32, i32) {
    %c0_i32 = arith.constant 0 : i32
    %c0_i32_0 = arith.constant 0 : i32
    %c0_i32_1 = arith.constant 0 : i32
    return %c0_i32, %c0_i32_0 : i32, i32
  }
  func.func @transform_4(%arg0: i32) -> (i32, i32, i32) {
    %c0_i32 = arith.constant 0 : i32
    %c0_i32_0 = arith.constant 0 : i32
    %c0_i32_1 = arith.constant 0 : i32
    return %arg0, %c0_i32, %c0_i32_0 : i32, i32, i32
  }
}

</mosaic_0001>

<bundles_post_ra>
// kernel: tpu_custom_call.1
= control target key start
LH: loop header
LB: loop body
LE: loop exit
PB: predicated region body
PF: predicated region fallthrough
CT: control target
= control target key end

     0   :  { %9 = vsyncpa [#allocation4], 0  ;;  %s1934_s0 = inlined_call_operand.hbm [shape: f32[2,8,32], index: 0, kind: input, shape index: {}]   ;;  %s1935_s1 = inlined_call_operand.hbm [shape: f32[32,96], index: 1, kind: input, shape index: {}]   ;;  %s1936_s2 = inlined_call_operand.hbm [shape: f32[32,32], index: 2, kind: input, shape index: {}]   ;;  %s1937_s3 = inlined_call_operand.vmem [shape: f32[1,32], index: 3, kind: input, shape index: {}]   ;;  %s1938_s4 = inlined_call_operand.hbm [shape: f32[2,8,32], index: 4, kind: output, shape index: {}]  }
   0x1   :  { %11 = vsyncpa [#allocation4 + $0x1], 0 }
   0x2   :  { %12 = vsyncpa [#allocation7], 0 }
   0x3   :  { %13 = vsyncpa [#allocation5], 0 }
   0x4   :  { %15 = vsyncpa [#allocation5 + $0x1], 0  ;;  %s1628_s15 = smov 0   ;;  %s1630_s16 = smov 0  }
   0x5   :  { %s1632_s17 = smov 0   ;;  %s1634_s18 = smov 0  }
   0x6 LB: > { %s1649_s19 = sadd.s32 4294967295, %s1578_s18   ;;  %s1189_s20 = sadd.s32 4294967294, %s1578_s18   ;;  %s1578_s18 = sphi %s1634_s18, %s1958_s18   ;;  %s1574_s17 = sphi %s1632_s17, %s1957_s17   ;;  %s1570_s16 = sphi %s1630_s16, %s1956_s16   ;;  %s1566_s15 = sphi %s1628_s15, %s1955_s15  }
   0x7   : > { %p41_p0 = scmp.ne.s32.totalorder %s1570_s16, %s1566_s15  ;;  %p1939_p1 = scmp.eq.s32.totalorder %s1649_s19, 0 }
   0x8   : > { %p134_p3 = scmp.eq.s32.totalorder %s1189_s20, 1  ;;  %p1190_p5 = scmp.ge.s32.totalorder %s1578_s18, 1 }
   0x9   : > { %p1658_p4 = por %p1939_p1, %p41_p0  ;;  %p141_p7 = scmp.lt.s32.totalorder %s1578_s18, 3 }
   0xa   : > { %p1663_p6 = por %p134_p3, %p41_p0  ;;  %s1580_s24 = smov [#allocation6]  }
   0xb   : > { %s1942_s21 = scalar_select %p1658_p4, 1, 0 }
   0xc   : > { %s1943_s22 = scalar_select %p1663_p6, 1, 0 }
   0xd   : > { %p1668_p8 = pnand %p1190_p5, %p141_p7  ;;  %s153_s25 = sshll.u32 %s1580_s24, 4  ;;  %s1672_s25 = int_to_ptr.vmem [resolvable:$true] %s153_s25 }
   0xe   : > { %s1581_s27 = smov [#allocation8]   ;;  %s1422_s5 = scalar_lea.hbm %s1935_s1, 512 }
   0xf   : > { %p1332_p9 = pneg %p1668_p8  ;;  %s166_s28 = sshll.u32 %s1581_s27, 4  ;;  %s1683_s28 = int_to_ptr.vmem [resolvable:$true] %s166_s28 }
  0x10   : > { %p1423_p12 = scmp.ne.s32.totalorder %s1935_s1, %s1422_s5  ;;  %p1429_p5 = scmp.lt.u32.totalorder %s1422_s5, %s1935_s1 }
  0x11   : > { %p1679_p11 = pnand %p1332_p9, %p1939_p1 }
  0x13   : > { %p1424_p13 = pneg %p1679_p11 }
  0x15   : > { %p1425_p0 = pnand %p1424_p13, %p1423_p12 }
  0x17   : > { %p1426_p3 = pneg %p1425_p0 }
  0x19   : > { %p1431_p7 = pnand %p1429_p5, %p1426_p3 }
  0x1b   : > { %1434 = shalt.err (!%p1431_p7)
}
  0x1c   : > { %s1435_s10 = scalar_lea.vmem %s1672_s25, 512  ;;  %p1443_p2 = scmp.lt.s32.totalorder %s1672_s25, %s1672_s25 }
  0x1d   : > { %p1436_p9 = scmp.ne.s32.totalorder %s1672_s25, %s1435_s10  ;;  %p1444_p12 = scmp.lt.s32.totalorder %s1435_s10, %s1435_s10 }
  0x1f   : > { %p1438_p10 = pnand %p1436_p9, %p1424_p13  ;;  %p1445_p0 = por %p1444_p12, %p1443_p2 }
  0x21   : > { %p1439_p1 = pneg %p1438_p10 }
  0x23   : > { %p1446_p6 = pnand %p1445_p0, %p1439_p1 }
  0x25   : > { %1449 = shalt.err (!%p1446_p6)
}
  0x26   : > { %s1582_s11 = smov 128   ;;  %s1583_s12 = smov 8  }
  0x27   : > { %1335 = dma.hbm_to_vmem [thread:$0]  (!%p1679_p11), %s1935_s1, 512, %s1672_s25, [#allocation7], %s1582_s11, %s1582_s11, %s1583_s12  }
  0x28   : > { %s1450_s27 = scalar_lea.hbm %s1936_s2, 512 }
  0x29   : > { %p1451_p2 = scmp.ne.s32.totalorder %s1936_s2, %s1450_s27  ;;  %p1457_p10 = scmp.lt.u32.totalorder %s1450_s27, %s1936_s2 }
  0x2b   : > { %p1453_p1 = pnand %p1451_p2, %p1424_p13 }
  0x2d   : > { %p1454_p6 = pneg %p1453_p1 }
  0x2f   : > { %p1459_p3 = pnand %p1457_p10, %p1454_p6 }
  0x31   : > { %1462 = shalt.err (!%p1459_p3)
}
  0x32   : > { %s1463_s25 = scalar_lea.vmem %s1683_s28, 512  ;;  %p1471_p12 = scmp.lt.s32.totalorder %s1683_s28, %s1683_s28 }
  0x33   : > { %p1464_p5 = scmp.ne.s32.totalorder %s1683_s28, %s1463_s25  ;;  %p1472_p0 = scmp.lt.s32.totalorder %s1463_s25, %s1463_s25 }
  0x35   : > { %p1466_p7 = pnand %p1464_p5, %p1424_p13  ;;  %p1473_p2 = por %p1472_p0, %p1471_p12 }
  0x37   : > { %p1467_p9 = pneg %p1466_p7 }
  0x39   : > { %p1474_p1 = pnand %p1473_p2, %p1467_p9 }
  0x3b   : > { %1477 = shalt.err (!%p1474_p1)
}
  0x3c   : > { %1338 = dma.hbm_to_vmem [thread:$0]  (!%p1679_p11), %s1936_s2, 512, %s1683_s28, [#allocation7], %s1582_s11, %s1582_s11, %s1583_s12  }
  0x3d   : > { %s1738_s9 = sadd.s32 1, %s1578_s18   ;;  %s28_s26 = sadd.s32 1, %s1574_s17 }
  0x3e   : > { %s25_s10 = ssub.s32 %s1578_s18, %s1738_s9  ;;  %p35_p13 = scmp.ne.s32.totalorder %s1574_s17, %s1570_s16 }
  0x3f   : > { %p26_p6 = scmp.eq.s32.totalorder %s25_s10, 0  ;;  %p36_p10 = scmp.eq.s32.totalorder %s1578_s18, 0 }
  0x40   : > { %p1946_p3 = scmp.eq.s32.totalorder %s1649_s19, 1  ;;  %p1349_p7 = scmp.lt.s32.totalorder %s1578_s18, 2 }
  0x41   : > { %s1754_s14 = scalar_select %p26_p6, %s1574_s17, %s28_s26  }
  0x42   : > { %p1748_p5 = por %p1946_p3, %p35_p13  ;;  %p37_p9 = por %p36_p10, %p35_p13 }
  0x43   : > { %s183_s20 = sand.u32 1, %s1574_s17   ;;  %s1195_s28 = sshll.u32 %s1578_s18, 7 }
  0x44   : > { %s1947_s13 = scalar_select %p1748_p5, 1, 0 }
  0x45   : > { %s1194_s24 = sshll.u32 %s183_s20, 3  ;;  %s1761_s27 = scalar_lea.hbm %s1934_s0, %s1195_s28 }
  0x46   : > { %s187_s29 = scalar_lea.vmem [#allocation3], %s1194_s24  ;;  %p1765_p11 = pnand %p1349_p7, %p37_p9 }
  0x47   : > { %s194_s30 = sshll.u32 %s187_s29, 4  ;;  %s184_s6 = scalar_lea.sflag [#allocation4], %s183_s20  ;;  %s1763_s30 = int_to_ptr.vmem [resolvable:$true] %s194_s30 }
  0x48   : > { %s1478_s25 = scalar_lea.hbm %s1761_s27, 128  ;;  %p1480_p0 = pneg %p1765_p11 }
  0x49   : > { %p1479_p12 = scmp.ne.s32.totalorder %s1761_s27, %s1478_s25  ;;  %s1483_s26 = scalar_lea.hbm %s1934_s0, 256 }
  0x4a   : > { %p1484_p13 = scmp.lt.u32.totalorder %s1761_s27, %s1934_s0  ;;  %p1485_p6 = scmp.lt.u32.totalorder %s1483_s26, %s1478_s25 }
  0x4b   : > { %p1481_p2 = pnand %p1480_p0, %p1479_p12  ;;  %p1487_p3 = scmp.lt.u32.totalorder %s1478_s25, %s1761_s27 }
  0x4c   : > { %p1486_p10 = por %p1485_p6, %p1484_p13 }
  0x4d   : > { %p1482_p1 = pneg %p1481_p2 }
  0x4e   : > { %p1488_p7 = por %p1487_p3, %p1486_p10 }
  0x50   : > { %p1489_p9 = pnand %p1488_p7, %p1482_p1 }
  0x52   : > { %1492 = shalt.err (!%p1489_p9)
}
  0x53   : > { %s1493_s20 = scalar_lea.vmem %s1763_s30, 128  ;;  %s1584_s28 = smov [#allocation3]  }
  0x54   : > { %p1494_p12 = scmp.ne.s32.totalorder %s1763_s30, %s1493_s20  ;;  %s1498_s11 = sshll.u32 %s1584_s28, 4  ;;  %s1499_s11 = int_to_ptr.vmem [resolvable:$false] %s1498_s11 }
  0x55   : > { %s1500_s12 = scalar_lea.vmem %s1499_s11, 256  ;;  %p1501_p4 = scmp.lt.s32.totalorder %s1763_s30, %s1499_s11 }
  0x56   : > { %p1496_p2 = pnand %p1494_p12, %p1480_p0  ;;  %p1502_p13 = scmp.lt.s32.totalorder %s1500_s12, %s1493_s20 }
  0x58   : > { %p1497_p5 = pneg %p1496_p2  ;;  %p1503_p6 = por %p1502_p13, %p1501_p4 }
  0x5a   : > { %p1504_p10 = pnand %p1503_p6, %p1497_p5 }
  0x5c   : > { %1507 = shalt.err (!%p1504_p10)
}
  0x5d   : > { %1342 = dma.hbm_to_vmem [thread:$0]  (!%p1765_p11), %s1761_s27, 128, %s1763_s30, %s184_s6  }
  0x5e   : > { %203 = sbr.rel (%p1668_p8) target bundleno = 1762 (0x6e2), region = 36  ;;  %s1797_s29 = sand.u32 (!%p1668_p8), 1, %s1570_s16  }
  0x5f   : > { %s1197_s25 = sshll.u32 (!%p1668_p8), %s1797_s29, 3  ;;  %s206_s7 = scalar_lea.sflag (!%p1668_p8), [#allocation4], %s1797_s29 }
  0x60   : > { %s209_s8 = scalar_lea.vmem (!%p1668_p8), [#allocation3], %s1197_s25  ;;  %p1949_p4 = scmp.ne.s32.totalorder (!%p1668_p8), %s1942_s21, 0 }
  0x65   : > { %1553 = dma.done.wait (%p1949_p4), %s206_s7, 128  }
  0x66   : > { %1555 = vsyncadd (%p1949_p4), %s206_s7, 4294967168  ;;  %p1950_p5 = scmp.eq.s32.totalorder %s1649_s19, 0 }
  0x68   : > { %1557 = dma.done.wait (%p1950_p5), [#allocation7], 1024   ;;  %p1951_p8 = pmov %p1950_p5 }
  0x69   : > { %v1585_v0 = vmov 0.0|0.0   ;;  %vm1586_vm0 = vmmov 0   ;;  %v1587_v1 = vmov 0.0   ;;  %v243_v2 = vld [vmem:[#allocation6] sm:$0xff]  ;;  %v244_v3 = vld [vmem:[#allocation6 + $0x8] sm:$0xff]  ;;  %v245_v4 = vld [vmem:[#allocation6 + $0x10] sm:$0xff] }
  0x6a   : > { %1559 = vsyncadd (%p1951_p8), [#allocation7], 4294966272  ;;  %1308 = vmatprep.subr.bf16.mxu0 %v1585_v0  ;;  %1254 = vmatprep.mubr.msk.f32.mxu0 %vm1586_vm0, %v1587_v1  ;;  %v1309_v5 = vpack.c.bf16 %v244_v3, %v243_v2  ;;  %v246_v6 = vld [vmem:[#allocation6 + $0x18] sm:$0xff]  ;;  %vm247_vm1 = vcmask 261120   ;;  %s1588_s21 = smov 64   ;;  %s1589_s23 = smov 96  }
  0x6b   : > { %1257 = vmatprep.subr.mxu1 %v1587_v1  ;;  %1259 = vmatprep.mubr.msk.f32.mxu1 %vm1586_vm0, %v1587_v1  ;;  %v1312_v7 = vpack.c.bf16 %v246_v6, %v245_v4  ;;  %v242_v8 = vld [vmem:[%s209_s8] sm:$0xff]  ;;  %s1590_s27 = smov 88   ;;  %s1591_s30 = smov 120   ;;  %vm324_vm2 = vcmask 64512   ;;  %v1001_v62 = vld [vmem:[#allocation8] sm:$0xff]  ;;  %v1002_v63 = vld [vmem:[#allocation8 + $0x8] sm:$0xff] }
  0x6c   : > { %1310 = vmatpush3.bf16.msra.mxu0 %v1309_v5  ;;  %s1592_s5 = smov 80   ;;  %s1593_s6 = smov 112   ;;  %v1003_v2 = vld [vmem:[#allocation8 + $0x10] sm:$0xff]  ;;  %v1004_v3 = vld [vmem:[#allocation8 + $0x18] sm:$0xff]  ;;  %vm656_vm3 = vcmask 130112   ;;  %vm827_vm4 = vcmask 195712  }
  0x6d   : > { %1311 = vmatprep.subr.bf16.mxu0 %v1585_v0  ;;  %s1594_s26 = smov 72   ;;  %s1595_s10 = smov 104   ;;  %v1318_v6 = vpack.c.bf16 %v1004_v3, %v1003_v2  ;;  %vm998_vm5 = vcmask 261312  }
  0x6e   : > { %s1596_s24 = smov 56   ;;  %s1597_s20 = smov 40  }
  0x6f   : > { %s1598_s28 = smov 48   ;;  %s1599_s11 = smov 8  }
  0x70   : > { %1313 = vmatpush3.bf16.msra.mxu0 %v1312_v7  ;;  %s1600_s12 = smov 16   ;;  %s1601_s7 = smov 24  }
  0x71   : > { %1277 = vmatprep.subr.mxu0 %v1587_v1  ;;  %p1952_p0 = scmp.ne.s32.totalorder %s1947_s13, 0 }
  0x73   : > { %1255 = vmatmul.mubr.msk.f32.vlgmr.msra.gmra.mrb[0].mxu0 %vm247_vm1, %v242_v8 }
  0x74   : > { %1279 = vmatprep.mubr.msk.f32.mxu0 %vm1586_vm0, %v1587_v1 }
 0x146   : > { %v1822_v9 = vpop.f32.mrb[0].mxu0 }
 0x147   : > { %408 = vrot.lane.b32.xlu1 %v1822_v9, %s1588_s21  ;;  %322 = vrot.lane.b32.xlu0 %v1822_v9, %s1589_s23  ;;  %v1256_v10 = vpop.f32.mrb[1].mxu0  ;;  %s1217_s23 = sshll.u32 %s1649_s19, 7 }
 0x14b   : > { %489 = vrot.lane.b32.xlu1 %v1822_v9, %s1590_s27  ;;  %s241_s27 = scalar_lea.vmem [#allocation9], %s1197_s25  ;;  %s1602_s25 = smov [#allocation9]  }
 0x14f   : > { %487 = vrot.lane.b32.xlu1 %v1822_v9, %s1591_s30  ;;  %s1100_s30 = sshll.u32 %s241_s27, 4  ;;  %s1891_s30 = int_to_ptr.vmem [resolvable:$true] %s1100_s30 }
 0x150   : > { %s1508_s19 = scalar_lea.vmem %s1891_s30, 128 }
 0x151   : > { %p1509_p11 = scmp.ne.s32.totalorder %s1891_s30, %s1508_s19 }
 0x153   : > { %660 = vrot.lane.b32.xlu1 %v1822_v9, %s1592_s5  ;;  %p1510_p1 = pnand %p1509_p11, %p1952_p0 }
 0x155   : > { %p1511_p3 = pneg %p1510_p1 }
 0x157   : > { %658 = vrot.lane.b32.xlu1 %v1822_v9, %s1593_s6 }
 0x15b   : > { %831 = vrot.lane.b32.xlu1 %v1822_v9, %s1594_s26  ;;  %s1889_s26 = scalar_lea.hbm %s1938_s4, %s1217_s23 }
 0x15f   : > { %829 = vrot.lane.b32.xlu1 %v1822_v9, %s1595_s10  ;;  %s1087_s10 = scalar_lea.sflag [#allocation5], %s1797_s29 }
 0x1b9   : > { %v409_v11 = vpop.permute.xlu1 %408  ;;  %v323_v12 = vpop.permute.xlu0 %322 }
 0x1ba   : > { %1258 = vmatpush3.xpose.msk.msra.mxu1 %vm324_vm2, %v323_v12 }
 0x1bb   : > { %1262 = vmatprep.subr.mxu1 %v1587_v1 }
 0x1bd   : > { %v490_v13 = vpop.permute.xlu1 %489  ;;  %1260 = vmatmul.mubr.msk.f32.vlgmr.msra.gmra.mrb[0].mxu1 %vm324_vm2, %v1822_v9 }
 0x1be   : > { %1263 = vmatpush3.msra.mxu1 %v409_v11  ;;  %1264 = vmatprep.mubr.msk.f32.mxu1 %vm1586_vm0, %v1587_v1 }
 0x1bf   : > { %1267 = vmatprep.subr.mxu1 %v1587_v1 }
 0x1c1   : > { %v488_v14 = vpop.permute.xlu1 %487 }
 0x1c5   : > { %v661_v15 = vpop.permute.xlu1 %660 }
 0x1c6   : > { %1278 = vmatpush3.xpose.msk.msra.mxu0 %vm324_vm2, %v661_v15 }
 0x1c7   : > { %1287 = vmatprep.subr.mxu0 %v1587_v1 }
 0x1c9   : > { %v659_v16 = vpop.permute.xlu1 %658 }
 0x1ca   : > { %1280 = vmatmul.mubr.msk.f32.vlgmr.msra.gmra.mrb[2].mxu0 %vm324_vm2, %v659_v16 }
 0x1cb   : > { %1289 = vmatprep.mubr.msk.f32.mxu0 %vm1586_vm0, %v1587_v1 }
 0x1cd   : > { %v832_v17 = vpop.permute.xlu1 %831 }
 0x1ce   : > { %1288 = vmatpush3.xpose.msk.msra.mxu0 %vm324_vm2, %v832_v17 }
 0x1cf   : > { %1314 = vmatprep.subr.bf16.mxu0 %v1585_v0 }
 0x1d1   : > { %v830_v18 = vpop.permute.xlu1 %829 }
 0x1d2   : > { %1290 = vmatmul.mubr.msk.f32.vlgmr.msra.gmra.mrb[4].mxu0 %vm324_vm2, %v830_v18 }
 0x1d3   : > { %1305 = vmatprep.mubr.msk.f32.mxu0 %vm1586_vm0, %v1587_v1 }
 0x290   : > { %v395_v19 = vpop.f32.mrb[0].mxu1 }
 0x291   : > { %v1261_v20 = vpop.f32.mrb[1].mxu1  ;;  %v399_v21 = vsel %vm324_vm2, %v395_v19, -inf }
 0x292   : > { %400 = vmax.xlane.f32.xlu0 %v399_v21  ;;  %v1214_v20 = vld [vmem:[%s1937_s3] ss:$0 sm:$0xff] }
 0x29d   : > { %v732_v22 = vpop.f32.mrb[2].mxu0 }
 0x29e   : > { %v1281_v23 = vpop.f32.mrb[3].mxu0  ;;  %v736_v26 = vsel %vm324_vm2, %v732_v22, -inf }
 0x2a5   : > { %v903_v24 = vpop.f32.mrb[4].mxu0 }
 0x2a6   : > { %v1291_v25 = vpop.f32.mrb[5].mxu0  ;;  %v907_v27 = vsel %vm324_vm2, %v903_v24, -inf }
 0x2a8   : > { %574 = vrot.lane.b32.xlu0 %v1822_v9, %s1596_s24  ;;  %s1512_s24 = sshll.u32 %s1602_s25, 4  ;;  %s1513_s24 = int_to_ptr.vmem [resolvable:$false] %s1512_s24 }
 0x2a9   : > { %p1515_p7 = scmp.lt.s32.totalorder %s1891_s30, %s1513_s24 }
 0x2c7   : > { %737 = vmax.xlane.f32.xlu0 %v736_v26 }
 0x2cb   : > { %908 = vmax.xlane.f32.xlu0 %v907_v27 }
 0x2e1   : > { %916 = vrot.lane.b32.xlu0 %v1822_v9, %s1597_s20  ;;  %s1514_s20 = scalar_lea.vmem %s1513_s24, 256 }
 0x2e2   : > { %p1516_p9 = scmp.lt.s32.totalorder %s1514_s20, %s1508_s19 }
 0x2e4   : > { %p1517_p12 = por %p1516_p9, %p1515_p7 }
 0x2e6   : > { %p1518_p2 = pnand %p1517_p12, %p1511_p3 }
 0x31f   : > { %v401_v28 = vpop.xlane.xlu0 %400 }
 0x320   : > { %v402_v29 = vsub.f32 %v395_v19, %v401_v28 }
 0x322   : > { %v403_v30 = vmul.f32 1.442695, %v402_v29 }
 0x323   : > { %v575_v32 = vpop.permute.xlu0 %574 }
 0x324   : > { %1406 = vpow2.f32 %v403_v30 }
 0x32e   : > { %v1407_v31 = vpop.eup %1406 }
 0x32f   : > { %1265 = vmatmul.mubr.msk.f32.vlgmr.msra.gmra.mrb[2].mxu1 %vm324_vm2, %v1407_v31  ;;  %v405_v55 = vsel %vm324_vm2, %v1407_v31, 0.0 }
 0x330   : > { %1268 = vmatpush3.xpose.msk.msra.mxu1 %vm324_vm2, %v490_v13  ;;  %1269 = vmatprep.mubr.msk.f32.mxu1 %vm1586_vm0, %v1587_v1 }
 0x331   : > { %1272 = vmatprep.subr.mxu1 %v1587_v1 }
 0x333   : > { %1270 = vmatmul.mubr.msk.f32.vlgmr.msra.gmra.mrb[4].mxu1 %vm324_vm2, %v488_v14 }
 0x334   : > { %1273 = vmatpush3.msra.mxu1 %v575_v32  ;;  %1274 = vmatprep.mubr.msk.f32.mxu1 %vm1586_vm0, %v1587_v1 }
 0x335   : > { %1282 = vmatprep.subr.mxu1 %v1587_v1 }
 0x354   : > { %v738_v38 = vpop.xlane.xlu0 %737 }
 0x355   : > { %v739_v39 = vsub.f32 %v732_v22, %v738_v38 }
 0x357   : > { %v740_v40 = vmul.f32 1.442695, %v739_v39 }
 0x358   : > { %v909_v43 = vpop.xlane.xlu0 %908 }
 0x359   : > { %1408 = vpow2.f32 %v740_v40  ;;  %v910_v44 = vsub.f32 %v903_v24, %v909_v43 }
 0x35b   : > { %v911_v47 = vmul.f32 1.442695, %v910_v44 }
 0x35c   : > { %v917_v53 = vpop.permute.xlu0 %916 }
 0x363   : > { %v1409_v41 = vpop.eup %1408 }
 0x364   : > { %v742_v42 = vsel %vm324_vm2, %v1409_v41, 0.0 }
 0x402   : > { %v480_v33 = vpop.f32.mrb[2].mxu1 }
 0x403   : > { %v1266_v34 = vpop.f32.mrb[3].mxu1 }
 0x406   : > { %v561_v35 = vpop.f32.mrb[4].mxu1 }
 0x407   : > { %v1271_v36 = vpop.f32.mrb[5].mxu1  ;;  %v565_v37 = vsel %vm324_vm2, %v561_v35, -inf }
 0x408   : > { %566 = vmax.xlane.f32.xlu1 %v565_v37 }
 0x419   : > { %745 = vrot.lane.b32.xlu1 %v1822_v9, %s1598_s28 }
 0x43d   : > { %743 = vadd.xlane.f32.xlu1 %v742_v42 }
 0x495   : > { %v567_v45 = vpop.xlane.xlu1 %566 }
 0x496   : > { %v568_v46 = vsub.f32 %v561_v35, %v567_v45 }
 0x498   : > { %v569_v48 = vmul.f32 1.442695, %v568_v46 }
 0x499   : > { %v746_v50 = vpop.permute.xlu1 %745 }
 0x49a   : > { %1410 = vpow2.f32 %v569_v48 }
 0x49b   : > { %1412 = vpow2.f32 %v911_v47 }
 0x4a4   : > { %v1411_v49 = vpop.eup %1410 }
 0x4a5   : > { %1275 = vmatmul.mubr.msk.f32.vlgmr.msra.gmra.mrb[6].mxu1 %vm324_vm2, %v1411_v49  ;;  %v571_v51 = vsel %vm324_vm2, %v1411_v49, 0.0  ;;  %v1413_v52 = vpop.eup %1412 }
 0x4a6   : > { %1283 = vmatpush3.msra.mxu1 %v746_v50  ;;  %572 = vadd.xlane.f32.xlu0 %v571_v51  ;;  %v913_v54 = vsel %vm324_vm2, %v1413_v52, 0.0 }
 0x4a7   : > { %1284 = vmatprep.mubr.msk.f32.mxu1 %vm1586_vm0, %v1587_v1  ;;  %1292 = vmatprep.subr.mxu1 %v1587_v1 }
 0x4a9   : > { %1285 = vmatmul.mubr.msk.f32.vlgmr.msra.gmra.mrb[8].mxu1 %vm324_vm2, %v1409_v41 }
 0x4aa   : > { %1293 = vmatpush3.msra.mxu1 %v917_v53  ;;  %914 = vadd.xlane.f32.xlu0 %v913_v54 }
 0x4ab   : > { %1294 = vmatprep.mubr.msk.f32.mxu1 %vm1586_vm0, %v1587_v1  ;;  %v1315_v1 = vpack.c.bf16 %v1002_v63, %v1001_v62 }
 0x4ad   : > { %1295 = vmatmul.mubr.msk.f32.vlgmr.msra.gmra.mrb[10].mxu1 %vm324_vm2, %v1413_v52  ;;  %1316 = vmatpush3.bf16.msra.mxu0 %v1315_v1 }
 0x4ae   : > { %406 = vadd.xlane.f32.xlu0 %v405_v55  ;;  %1317 = vmatprep.subr.bf16.mxu0 %v1585_v0 }
 0x4b1   : > { %1319 = vmatpush3.bf16.msra.mxu0 %v1318_v6 }
 0x4ca   : > { %v744_v61 = vpop.xlane.xlu1 %743 }
 0x533   : > { %v573_v56 = vpop.xlane.xlu0 %572 }
 0x537   : > { %v915_v57 = vpop.xlane.xlu0 %914 }
 0x53b   : > { %v407_v58 = vpop.xlane.xlu0 %406 }
 0x53c   : > { %1414 = vrcp.f32 %v407_v58 }
 0x53d   : > { %1416 = vrcp.f32 %v573_v56 }
 0x53e   : > { %1418 = vrcp.f32 %v744_v61 }
 0x53f   : > { %1420 = vrcp.f32 %v915_v57 }
 0x546   : > { %v1415_v59 = vpop.eup %1414 }
 0x547   : > { %v485_v60 = vmul.f32 %v1415_v59, %v480_v33  ;;  %v1417_v4 = vpop.eup %1416 }
 0x548   : > { %v1419_v9 = vpop.eup %1418 }
 0x549   : > { %486 = vst.msk [vmem:[#allocation2] sm:$0xff] %vm324_vm2, %v485_v60  ;;  %v1421_v13 = vpop.eup %1420 }
 0x578   : > { %v646_v5 = vpop.f32.mrb[6].mxu1 }
 0x579   : > { %v651_v7 = vmul.f32 %v1417_v4, %v646_v5  ;;  %v1276_v8 = vpop.f32.mrb[7].mxu1 }
 0x57b   : > { %653 = vrot.lane.b32.xlu0 %v651_v7, %s1599_s11 }
 0x57c   : > { %v817_v10 = vpop.f32.mrb[8].mxu1 }
 0x57d   : > { %v822_v11 = vmul.f32 %v1419_v9, %v817_v10  ;;  %v1286_v12 = vpop.f32.mrb[9].mxu1 }
 0x57f   : > { %824 = vrot.lane.b32.xlu1 %v822_v11, %s1600_s12 }
 0x580   : > { %v988_v14 = vpop.f32.mrb[10].mxu1 }
 0x581   : > { %v993_v15 = vmul.f32 %v1421_v13, %v988_v14  ;;  %v1296_v16 = vpop.f32.mrb[11].mxu1 }
 0x583   : > { %995 = vrot.lane.b32.xlu0 %v993_v15, %s1601_s7 }
 0x5ed   : > { %v654_v17 = vpop.permute.xlu0 %653 }
 0x5ee   : > { %657 = vst.msk [vmem:[#allocation2] sm:$0xff] %vm656_vm3, %v654_v17 }
 0x5f1   : > { %v825_v0 = vpop.permute.xlu1 %824 }
 0x5f2   : > { %828 = vst.msk [vmem:[#allocation2] sm:$0xff] %vm827_vm4, %v825_v0 }
 0x5f5   : > { %v996_v18 = vpop.permute.xlu0 %995 }
 0x5f6   : > { %999 = vst.msk [vmem:[#allocation2] sm:$0xff] %vm998_vm5, %v996_v18 }
 0x5fd   : > { %v1000_v19 = vld [vmem:[#allocation2] sm:$0xff] }
 0x5fe   : > { %1306 = vmatmul.mubr.msk.f32.vlgmr.msra.gmra.mrb[6].mxu0 %vm247_vm1, %v1000_v19 }
 0x6d1   : > { %v1081_v21 = vpop.f32.mrb[6].mxu0 }
 0x6d2   : > { %v1082_v22 = vadd.f32 %v1214_v20, %v1081_v21  ;;  %v1307_v23 = vpop.f32.mrb[7].mxu0 }
 0x6d4   : > { %1085 = vst.msk [vmem:[%s241_s27] sm:$0xff] %vm247_vm1, %v1082_v22 }
 0x6d5   : > { %1521 = shalt.err (!%p1518_p2)
}
 0x6d6   : > { %s1522_s29 = scalar_lea.hbm %s1889_s26, 128  ;;  %s1526_s12 = scalar_lea.hbm %s1938_s4, 256 }
 0x6d7   : > { %p1523_p13 = scmp.ne.s32.totalorder %s1889_s26, %s1522_s29  ;;  %p1527_p4 = scmp.lt.u32.totalorder %s1889_s26, %s1938_s4 }
 0x6d8   : > { %p1528_p5 = scmp.lt.u32.totalorder %s1526_s12, %s1522_s29  ;;  %p1530_p11 = scmp.lt.u32.totalorder %s1522_s29, %s1889_s26 }
 0x6d9   : > { %p1524_p6 = pnand %p1523_p13, %p1952_p0 }
 0x6da   : > { %p1529_p8 = por %p1528_p5, %p1527_p4 }
 0x6db   : > { %p1525_p10 = pneg %p1524_p6 }
 0x6dc   : > { %p1531_p1 = por %p1530_p11, %p1529_p8 }
 0x6de   : > { %p1532_p3 = pnand %p1531_p1, %p1525_p10 }
 0x6e0   : > { %1535 = shalt.err (!%p1532_p3)
}
 0x6e1   : > { %1330 = dma.vmem_to_hbm [thread:$0]  (%p1952_p0), %s1891_s30, 128, %s1889_s26, %s1087_s10  }
 0x6e2 PF: > { %s1112_s21 = sand.u32 1, %s1566_s15   ;;  %p1953_p7 = scmp.ne.s32.totalorder %s1943_s22, 0 }
 0x6e3   : > { %p1954_p9 = scmp.ge.s32.totalorder %s1578_s18, 2  ;;  %s1113_s23 = scalar_lea.sflag [#allocation5], %s1112_s21 }
 0x6e5   : > { %p1344_p12 = pnand %p1954_p9, %p1953_p7 }
 0x6e7   : > { %1561 = dma.done.wait (!%p1344_p12), %s1113_s23, 128  }
 0x6e8   : > { %1563 = vsyncadd (!%p1344_p12), %s1113_s23, 4294967168  ;;  %p18_p2 = scmp.ge.s32.totalorder %s1738_s9, 4   ;;  %s1955_s15 = smov %s1570_s16 }
 0x6e9   : > { %s1956_s16 = smov %s1574_s17  ;;  %s1957_s17 = smov %s1754_s14 }
 0x6ea   : > { %s1958_s18 = smov %s1738_s9  ;;  %20 = sbr.rel (!%p18_p2) target bundleno = 6 (0x6), region = 89 }
 0x6f1   :  { %1118 = vsyncpa [#allocation4], 1 }
 0x6f2   :  { %1120 = vsyncpa [#allocation4 + $0x1], 1 }
 0x6f3   :  { %1121 = vsyncpa [#allocation7], 1 }
 0x6f4   :  { %1122 = vsyncpa [#allocation5], 1 }
 0x6f5   :  { %1124 = vsyncpa [#allocation5 + $0x1], 1 }

</bundles_post_ra>
